<compile_context>
chip_gen: v7x
topology: tpu7x:2x2x1
jax: 0.10.0
libtpu: 0.0.40
codegen_flags: <defaults>
</compile_context>

<pallas_src>
import functools

import jax
import jax.numpy as jnp
from jax import lax
from jax.experimental import pallas as pl
from jax.experimental.pallas import tpu as pltpu


def _roundup(x, m):
    return (x + m - 1) // m * m


def _vmem_capacity_bytes():
    # Generation-aware VMEM cap (v5e/v6e: 128 MiB, v7x: 64 MiB per TensorCore).
    # Fall back to the smallest (v7x) so we never over-commit.
    try:
        return int(pltpu.get_tpu_info().vmem_capacity_bytes)
    except Exception:
        return 64 * 2**20


# ----------------------------------------------------------------------------
# Pallas kernel: channel attention (CALayer) + residual add, lane-dense D*H*W.
# ----------------------------------------------------------------------------
def ca_residual_kernel(buf_ref, x_ref, pmat_ref, bcast_ref, w1_ref, b1_ref,
                       w2_ref, b2_ref, o_ref):
    # buf_ref / x_ref / o_ref : (n_blk, C, D*HW)  -- D*HW is the lane axis
    # pmat_ref  : (D*HW, D)  block-averaging matrix (entries 1/HW per view)
    # bcast_ref : (D, D*HW)  0/1 view-indicator (broadcast back over HW lanes)
    # w1_ref (Cr, C)  b1_ref (Cr, 1)  w2_ref (C, Cr)  b2_ref (C, 1)  (BN folded)
    n_blk = buf_ref.shape[0]

    for i in range(n_blk):  # static unroll over batch items in this block
        # AdaptiveAvgPool3d((num_views,1,1)) with D == num_views: per-(c, d)
        # mean over the HW lanes of view d, as an MXU matmul (f32 accumulate).
        pooled = lax.dot_general(
            buf_ref[i], pmat_ref[...], (((1,), (0,)), ((), ())),
            preferred_element_type=jnp.float32)                       # (C, D)

        # 1x1x1 conv (+ folded bias & eval BN) -> LeakyReLU(0.1)
        z1 = jnp.dot(w1_ref[...], pooled,
                     preferred_element_type=jnp.float32) + b1_ref[...]  # (Cr, D)
        z1 = jnp.where(z1 > 0, z1, 0.1 * z1)

        # 1x1x1 conv (+ folded bias & eval BN) -> Sigmoid
        z2 = jnp.dot(w2_ref[...], z1,
                     preferred_element_type=jnp.float32) + b2_ref[...]  # (C, D)
        y = jax.nn.sigmoid(z2)                                          # (C, D)

        # Broadcast the per-view attention back over the HW lanes (pure 0/1
        # selection matmul -> lane-dense (C, D*HW) tile, no in-kernel reshape).
        y_full = jnp.dot(y, bcast_ref[...],
                         preferred_element_type=jnp.float32)            # (C, DHW)

        # Rescale + fused ResB3D residual.  buf_ref is re-read here instead of
        # keeping the full slab value live across the attention math.
        o_ref[i] = buf_ref[i] * y_full.astype(o_ref.dtype) + x_ref[i]


def _choose_n_block(N, per_item_bytes, target_bytes, budget_bytes):
    """Largest divisor of N whose per-stream block (a) fits the VMEM budget,
    (b) leaves >= 2 grid steps when N >= 2 (keeps both v7x TensorCores busy),
    and (c) stops growing once it reaches ~target_bytes (HBM-roofline sweet
    spot for per-step overhead amortisation)."""
    best = 1
    for nb in range(1, N + 1):
        if N % nb:
            continue
        if nb * per_item_bytes > budget_bytes:
            break
        if N >= 2 and N // nb < 2:
            break
        best = nb
        if nb * per_item_bytes >= target_bytes:
            break
    return best


def _conv3d(x, w):
    """3x3x3 conv, stride 1, padding 1, no bias.  x: (N,C,D,H,W), w: (O,I,3,3,3)."""
    return lax.conv_general_dilated(
        x, w, window_strides=(1, 1, 1),
        padding=((1, 1), (1, 1), (1, 1)),
        dimension_numbers=("NCDHW", "OIDHW", "NCDHW"))


# ----------------------------------------------------------------------------
# ResB3D forward: body in plain JAX, CALayer + residual in the Pallas kernel.
# ----------------------------------------------------------------------------
def resb3d_forward(x, p, eps=1e-5, num_views=9):
    N, C, D, H, W = x.shape
    Cr = p["ca_w1"].shape[0]
    if D != num_views:
        # TODO(synk): general adaptive pooling over D (D != num_views) not implemented.
        raise NotImplementedError("CALayer pooling implemented only for D == num_views")

    scale = lambda g, v: g / jnp.sqrt(v + eps)
    rs = lambda a: a.reshape(1, -1, 1, 1, 1)

    # ---- body: Conv3d -> BN -> LeakyReLU -> Conv3d -> BN (eval-mode BN folded)
    g1, be1, m1, v1 = p["body_bn1"]
    g2, be2, m2, v2 = p["body_bn2"]
    s1, t1 = scale(g1, v1), be1 - m1 * scale(g1, v1)
    s2, t2 = scale(g2, v2), be2 - m2 * scale(g2, v2)
    buf = _conv3d(x, p["body_w1"]) * rs(s1) + rs(t1)
    buf = jnp.where(buf > 0, buf, 0.1 * buf)
    buf = _conv3d(buf, p["body_w2"]) * rs(s2) + rs(t2)

    # ---- fold CALayer 1x1x1-conv bias + eval-mode BN into weights / bias ----
    cg1, cb1, cm1, cv1 = p["ca_bn1"]
    cg2, cb2, cm2, cv2 = p["ca_bn2"]
    cs1, ct1 = scale(cg1, cv1), cb1 - cm1 * scale(cg1, cv1)
    cs2, ct2 = scale(cg2, cv2), cb2 - cm2 * scale(cg2, cv2)
    w1f = (p["ca_w1"] * cs1[:, None]).astype(jnp.float32)              # (Cr, C)
    b1f = (p["ca_b1"] * cs1 + ct1).reshape(Cr, 1).astype(jnp.float32)  # (Cr, 1)
    w2f = (p["ca_w2"] * cs2[:, None]).astype(jnp.float32)              # (C, Cr)
    b2f = (p["ca_b2"] * cs2 + ct2).reshape(C, 1).astype(jnp.float32)   # (C, 1)

    # ---- CALayer + residual: fused Pallas kernel, lane-dense over D*H*W -----
    HW = H * W
    DHW = D * HW
    buf3 = buf.reshape(N, C, DHW)        # contiguous merge of D,H,W: free reshape
    x3 = x.reshape(N, C, DHW)

    # pmat[l, d]  = 1/HW if lane l belongs to view d (per-view averaging)
    # bcast[d, l] = 1    if lane l belongs to view d (broadcast back over HW)
    pmat = jnp.repeat(jnp.eye(D, dtype=jnp.float32) / HW, HW, axis=0)  # (DHW, D)
    bcast = jnp.repeat(jnp.eye(D, dtype=jnp.float32), HW, axis=1)      # (D, DHW)

    itemsize = jnp.dtype(x.dtype).itemsize
    # Padded ((8,128)-tiled) VMEM footprint per batch item, per stream.
    per_item = _roundup(C, 8) * _roundup(DHW, 128) * itemsize
    vmem_cap = _vmem_capacity_bytes()
    headroom = 4 * 2**20
    # 3 streams (buf, x, out) x 2 pipeline buffers + margin  -> conservative /8.
    budget = (vmem_cap - headroom) // 8
    n_blk = _choose_n_block(N, per_item, target_bytes=1 * 2**20, budget_bytes=budget)

    small = itemsize * (
        _roundup(DHW, 8) * _roundup(D, 128)      # pmat
        + _roundup(D, 8) * _roundup(DHW, 128)    # bcast
        + _roundup(Cr, 8) * _roundup(C, 128)     # w1
        + _roundup(Cr, 8) * 128                  # b1
        + _roundup(C, 8) * _roundup(Cr, 128)     # w2
        + _roundup(C, 8) * 128)                  # b2
    needed = 6 * n_blk * per_item + 2 * small + 2 * 2**20
    if needed > vmem_cap - headroom:
        # TODO(synk): fall back to splitting the D*HW lane axis into whole-view,
        #             128-aligned chunks instead of failing outright.
        raise ValueError(
            f"ResB3D CALayer block needs ~{needed >> 20} MiB VMEM but device "
            f"has only {vmem_cap >> 20} MiB per core")
    vmem_limit = int(min(vmem_cap - headroom, max(needed + 4 * 2**20, 32 * 2**20)))

    out = pl.pallas_call(
        ca_residual_kernel,
        out_shape=jax.ShapeDtypeStruct((N, C, DHW), x.dtype),
        grid_spec=pltpu.PrefetchScalarGridSpec(
            num_scalar_prefetch=0,
            grid=(N // n_blk,),
            in_specs=[
                pl.BlockSpec((n_blk, C, DHW), lambda i: (i, 0, 0)),   # buffer slab
                pl.BlockSpec((n_blk, C, DHW), lambda i: (i, 0, 0)),   # residual x
                pl.BlockSpec((DHW, D), lambda i: (0, 0)),             # averaging mat
                pl.BlockSpec((D, DHW), lambda i: (0, 0)),             # broadcast mat
                pl.BlockSpec((Cr, C), lambda i: (0, 0)),              # folded w1
                pl.BlockSpec((Cr, 1), lambda i: (0, 0)),              # folded b1
                pl.BlockSpec((C, Cr), lambda i: (0, 0)),              # folded w2
                pl.BlockSpec((C, 1), lambda i: (0, 0)),               # folded b2
            ],
            out_specs=pl.BlockSpec((n_blk, C, DHW), lambda i: (i, 0, 0)),
        ),
        compiler_params=pltpu.CompilerParams(
            dimension_semantics=("parallel",),
            vmem_limit_bytes=vmem_limit),
    )(buf3, x3, pmat, bcast, w1f, b1f, w2f, b2f)

    return out.reshape(N, C, D, H, W)


# ----------------------------------------------------------------------------
# Pure-JAX reference (NCDHW, eval-mode BN applied unfolded), for checking.
# ----------------------------------------------------------------------------
def resb3d_ref(x, p, eps=1e-5):
    def bn(z, g, b, m, v, e):
        rs = lambda a: a.reshape(1, -1, 1, 1, 1)
        return (z - rs(m)) / jnp.sqrt(rs(v) + e) * rs(g) + rs(b)

    leaky = lambda z: jnp.where(z > 0, z, 0.1 * z)

    buf = leaky(bn(_conv3d(x, p["body_w1"]), *p["body_bn1"], eps))
    buf = bn(_conv3d(buf, p["body_w2"]), *p["body_bn2"], eps)

    y = jnp.mean(buf, axis=(3, 4), keepdims=True)                       # (N,C,D,1,1)
    y = jnp.einsum("ncdhw,rc->nrdhw", y, p["ca_w1"]) \
        + p["ca_b1"].reshape(1, -1, 1, 1, 1)
    y = leaky(bn(y, *p["ca_bn1"], eps))
    y = jnp.einsum("nrdhw,cr->ncdhw", y, p["ca_w2"]) \
        + p["ca_b2"].reshape(1, -1, 1, 1, 1)
    y = jax.nn.sigmoid(bn(y, *p["ca_bn2"], eps))
    return buf * y + x


if __name__ == "__main__":
    # ResB3D uses CALayer(channels, num_views=9); channels >= 16 so C//16 >= 1.
    N, C, D, H, W = 2, 32, 9, 8, 8
    Cr = C // 16

    key = jax.random.PRNGKey(0)
    ks = iter(jax.random.split(key, 32))
    nrm = lambda shape, s=0.1: s * jax.random.normal(next(ks), shape, jnp.float32)

    def bn_params(c):
        return (1.0 + nrm((c,)),                                              # gamma
                nrm((c,)),                                                    # beta
                nrm((c,), 0.05),                                              # running mean
                1.0 + 0.1 * jnp.abs(jax.random.normal(next(ks), (c,), jnp.float32)))  # var

    x = jax.random.normal(next(ks), (N, C, D, H, W), jnp.float32)
    params = {
        "body_w1": nrm((C, C, 3, 3, 3), 0.05),
        "body_bn1": bn_params(C),
        "body_w2": nrm((C, C, 3, 3, 3), 0.05),
        "body_bn2": bn_params(C),
        "ca_w1": nrm((Cr, C), 0.1),   # PyTorch Conv3d weight (out, in) squeezed
        "ca_b1": nrm((Cr,), 0.1),
        "ca_bn1": bn_params(Cr),
        "ca_w2": nrm((C, Cr), 0.1),
        "ca_b2": nrm((C,), 0.1),
        "ca_bn2": bn_params(C),
    }

    out = resb3d_forward(x, params)
    out = jax.block_until_ready(out)

    ref = resb3d_ref(x, params)
    assert out.shape == x.shape
    # Small slack over f32 exactness for the pooling-by-matmul reordering.
    assert jnp.allclose(out, ref, atol=2e-4, rtol=2e-4), "mismatch vs reference"

    print("KERNEL_OK")
</pallas_src>

<mosaic_0001>
module attributes {stable_mosaic.version = 11 : i64} {
  func.func @ca_residual_kernel(%arg0: i32, %arg1: memref<1x32x576xf32, #tpu.memory_space<vmem>>, %arg2: memref<1x32x576xf32, #tpu.memory_space<vmem>>, %arg3: memref<576x9xf32, #tpu.memory_space<vmem>>, %arg4: memref<9x576xf32, #tpu.memory_space<vmem>>, %arg5: memref<2x32xf32, #tpu.memory_space<vmem>>, %arg6: memref<2x1xf32, #tpu.memory_space<vmem>>, %arg7: memref<32x2xf32, #tpu.memory_space<vmem>>, %arg8: memref<32x1xf32, #tpu.memory_space<vmem>>, %arg9: memref<1x32x576xf32, #tpu.memory_space<vmem>>) attributes {dimension_semantics = [#tpu.dimension_semantics<parallel>], iteration_bounds = array<i64: 2>, scalar_prefetch = 0 : i64, scratch_operands = 0 : i64, tpu.core_type = #tpu.core_type<tc>, window_params = [{transform_indices = @transform_0, window_bounds = array<i64: 1, 32, 576>}, {transform_indices = @transform_1, window_bounds = array<i64: 1, 32, 576>}, {pipeline_mode = #tpu.pipeline_mode<synchronous>, transform_indices = @transform_2, window_bounds = array<i64: 576, 9>}, {pipeline_mode = #tpu.pipeline_mode<synchronous>, transform_indices = @transform_3, window_bounds = array<i64: 9, 576>}, {pipeline_mode = #tpu.pipeline_mode<synchronous>, transform_indices = @transform_4, window_bounds = array<i64: 2, 32>}, {pipeline_mode = #tpu.pipeline_mode<synchronous>, transform_indices = @transform_5, window_bounds = array<i64: 2, 1>}, {pipeline_mode = #tpu.pipeline_mode<synchronous>, transform_indices = @transform_6, window_bounds = array<i64: 32, 2>}, {pipeline_mode = #tpu.pipeline_mode<synchronous>, transform_indices = @transform_7, window_bounds = array<i64: 32, 1>}, {transform_indices = @transform_8, window_bounds = array<i64: 1, 32, 576>}]} {
    %c0 = arith.constant 0 : index
    %c0_0 = arith.constant 0 : index
    %c0_1 = arith.constant 0 : index
    %0 = vector.load %arg1[%c0, %c0_0, %c0_1] : memref<1x32x576xf32, #tpu.memory_space<vmem>>, vector<1x32x576xf32>
    %1 = vector.shape_cast %0 : vector<1x32x576xf32> to vector<32x576xf32>
    %c0_2 = arith.constant 0 : index
    %c0_3 = arith.constant 0 : index
    %2 = vector.load %arg3[%c0_2, %c0_3] : memref<576x9xf32, #tpu.memory_space<vmem>>, vector<576x9xf32>
    %cst = arith.constant dense<0.000000e+00> : vector<32x9xf32>
    %3 = tpu.matmul %1, %2, %cst {dimension_numbers = #tpu.dot_dimension_numbers<[1], [0], [0], [1], [0, 0, 1, 1], [], []>} : vector<32x576xf32>, vector<576x9xf32>, vector<32x9xf32> -> vector<32x9xf32>
    %c0_4 = arith.constant 0 : index
    %c0_5 = arith.constant 0 : index
    %4 = vector.load %arg5[%c0_4, %c0_5] : memref<2x32xf32, #tpu.memory_space<vmem>>, vector<2x32xf32>
    %cst_6 = arith.constant dense<0.000000e+00> : vector<2x9xf32>
    %5 = tpu.matmul %4, %3, %cst_6 {dimension_numbers = #tpu.dot_dimension_numbers<[1], [0], [0], [1], [0, 0, 1, 1], [], []>} : vector<2x32xf32>, vector<32x9xf32>, vector<2x9xf32> -> vector<2x9xf32>
    %c0_7 = arith.constant 0 : index
    %c0_8 = arith.constant 0 : index
    %6 = vector.load %arg6[%c0_7, %c0_8] : memref<2x1xf32, #tpu.memory_space<vmem>>, vector<2x1xf32>
    %7 = vector.broadcast %6 : vector<2x1xf32> to vector<2x9xf32>
    %8 = arith.addf %5, %7 : vector<2x9xf32>
    %cst_9 = arith.constant 0.000000e+00 : f32
    %9 = vector.broadcast %cst_9 : f32 to vector<2x9xf32>
    %10 = arith.cmpf ogt, %8, %9 : vector<2x9xf32>
    %cst_10 = arith.constant 1.000000e-01 : f32
    %11 = vector.broadcast %cst_10 : f32 to vector<2x9xf32>
    %12 = arith.mulf %11, %8 : vector<2x9xf32>
    %13 = arith.select %10, %8, %12 : vector<2x9xi1>, vector<2x9xf32>
    %c0_11 = arith.constant 0 : index
    %c0_12 = arith.constant 0 : index
    %14 = vector.load %arg7[%c0_11, %c0_12] : memref<32x2xf32, #tpu.memory_space<vmem>>, vector<32x2xf32>
    %cst_13 = arith.constant dense<0.000000e+00> : vector<32x9xf32>
    %15 = tpu.matmul %14, %13, %cst_13 {dimension_numbers = #tpu.dot_dimension_numbers<[1], [0], [0], [1], [0, 0, 1, 1], [], []>} : vector<32x2xf32>, vector<2x9xf32>, vector<32x9xf32> -> vector<32x9xf32>
    %c0_14 = arith.constant 0 : index
    %c0_15 = arith.constant 0 : index
    %16 = vector.load %arg8[%c0_14, %c0_15] : memref<32x1xf32, #tpu.memory_space<vmem>>, vector<32x1xf32>
    %17 = vector.broadcast %16 : vector<32x1xf32> to vector<32x9xf32>
    %18 = arith.addf %15, %17 : vector<32x9xf32>
    %19 = arith.negf %18 : vector<32x9xf32>
    %20 = math.exp %19 : vector<32x9xf32>
    %cst_16 = arith.constant 1.000000e+00 : f32
    %21 = vector.broadcast %cst_16 : f32 to vector<32x9xf32>
    %22 = arith.addf %21, %20 : vector<32x9xf32>
    %23 = arith.divf %21, %22 : vector<32x9xf32>
    %c0_17 = arith.constant 0 : index
    %c0_18 = arith.constant 0 : index
    %24 = vector.load %arg4[%c0_17, %c0_18] : memref<9x576xf32, #tpu.memory_space<vmem>>, vector<9x576xf32>
    %cst_19 = arith.constant dense<0.000000e+00> : vector<32x576xf32>
    %25 = tpu.matmul %23, %24, %cst_19 {dimension_numbers = #tpu.dot_dimension_numbers<[1], [0], [0], [1], [0, 0, 1, 1], [], []>} : vector<32x9xf32>, vector<9x576xf32>, vector<32x576xf32> -> vector<32x576xf32>
    %c0_20 = arith.constant 0 : index
    %c0_21 = arith.constant 0 : index
    %c0_22 = arith.constant 0 : index
    %26 = vector.load %arg1[%c0_20, %c0_21, %c0_22] : memref<1x32x576xf32, #tpu.memory_space<vmem>>, vector<1x32x576xf32>
    %27 = vector.shape_cast %26 : vector<1x32x576xf32> to vector<32x576xf32>
    %28 = arith.mulf %27, %25 : vector<32x576xf32>
    %c0_23 = arith.constant 0 : index
    %c0_24 = arith.constant 0 : index
    %c0_25 = arith.constant 0 : index
    %29 = vector.load %arg2[%c0_23, %c0_24, %c0_25] : memref<1x32x576xf32, #tpu.memory_space<vmem>>, vector<1x32x576xf32>
    %30 = vector.shape_cast %29 : vector<1x32x576xf32> to vector<32x576xf32>
    %31 = arith.addf %28, %30 : vector<32x576xf32>
    %c0_26 = arith.constant 0 : index
    %c0_27 = arith.constant 0 : index
    %c0_28 = arith.constant 0 : index
    %32 = vector.load %arg9[%c0_26, %c0_27, %c0_28] : memref<1x32x576xf32, #tpu.memory_space<vmem>>, vector<1x32x576xf32>
    %33 = vector.shape_cast %32 : vector<1x32x576xf32> to vector<32x576xf32>
    %34 = vector.shape_cast %31 : vector<32x576xf32> to vector<1x32x576xf32>
    tpu.vector_store %arg9[%c0_26, %c0_27, %c0_28], %34 {strides = array<i32>} : memref<1x32x576xf32, #tpu.memory_space<vmem>>, vector<1x32x576xf32>,
    return
  }
  func.func @transform_0(%arg0: i32) -> (i32, i32, i32) {
    %c0_i32 = arith.constant 0 : i32
    %c0_i32_0 = arith.constant 0 : i32
    %c0_i32_1 = arith.constant 0 : i32
    return %arg0, %c0_i32, %c0_i32_0 : i32, i32, i32
  }
  func.func @transform_1(%arg0: i32) -> (i32, i32, i32) {
    %c0_i32 = arith.constant 0 : i32
    %c0_i32_0 = arith.constant 0 : i32
    %c0_i32_1 = arith.constant 0 : i32
    return %arg0, %c0_i32, %c0_i32_0 : i32, i32, i32
  }
  func.func @transform_2(%arg0: i32) -> (i32, i32) {
    %c0_i32 = arith.constant 0 : i32
    %c0_i32_0 = arith.constant 0 : i32
    %c0_i32_1 = arith.constant 0 : i32
    return %c0_i32, %c0_i32_0 : i32, i32
  }
  func.func @transform_3(%arg0: i32) -> (i32, i32) {
    %c0_i32 = arith.constant 0 : i32
    %c0_i32_0 = arith.constant 0 : i32
    %c0_i32_1 = arith.constant 0 : i32
    return %c0_i32, %c0_i32_0 : i32, i32
  }
  func.func @transform_4(%arg0: i32) -> (i32, i32) {
    %c0_i32 = arith.constant 0 : i32
    %c0_i32_0 = arith.constant 0 : i32
    %c0_i32_1 = arith.constant 0 : i32
    return %c0_i32, %c0_i32_0 : i32, i32
  }
  func.func @transform_5(%arg0: i32) -> (i32, i32) {
    %c0_i32 = arith.constant 0 : i32
    %c0_i32_0 = arith.constant 0 : i32
    %c0_i32_1 = arith.constant 0 : i32
    return %c0_i32, %c0_i32_0 : i32, i32
  }
  func.func @transform_6(%arg0: i32) -> (i32, i32) {
    %c0_i32 = arith.constant 0 : i32
    %c0_i32_0 = arith.constant 0 : i32
    %c0_i32_1 = arith.constant 0 : i32
    return %c0_i32, %c0_i32_0 : i32, i32
  }
  func.func @transform_7(%arg0: i32) -> (i32, i32) {
    %c0_i32 = arith.constant 0 : i32
    %c0_i32_0 = arith.constant 0 : i32
    %c0_i32_1 = arith.constant 0 : i32
    return %c0_i32, %c0_i32_0 : i32, i32
  }
  func.func @transform_8(%arg0: i32) -> (i32, i32, i32) {
    %c0_i32 = arith.constant 0 : i32
    %c0_i32_0 = arith.constant 0 : i32
    %c0_i32_1 = arith.constant 0 : i32
    return %arg0, %c0_i32, %c0_i32_0 : i32, i32, i32
  }
}

</mosaic_0001>

<bundles_post_ra>
// kernel: tpu_custom_call.1
= control target key start
LH: loop header
LB: loop body
LE: loop exit
PB: predicated region body
PF: predicated region fallthrough
CT: control target
= control target key end

     0   :  { %13 = vsyncpa [#allocation3], 0  ;;  %s2478_s0 = inlined_call_operand.vmem [shape: f32[2,32,576], index: 0, kind: input, shape index: {}]   ;;  %s2479_s1 = inlined_call_operand.vmem [shape: f32[2,32,576], index: 1, kind: input, shape index: {}]   ;;  %s2480_s2 = inlined_call_operand.vmem [shape: f32[576,9], index: 2, kind: input, shape index: {}]   ;;  %s2481_s3 = inlined_call_operand.vmem [shape: f32[9,576], index: 3, kind: input, shape index: {}]   ;;  %s2482_s4 = inlined_call_operand.vmem [shape: f32[2,32], index: 4, kind: input, shape index: {}]   ;;  %s2483_s5 = inlined_call_operand.vmem [shape: f32[2,1], index: 5, kind: input, shape index: {}]   ;;  %s2484_s6 = inlined_call_operand.vmem [shape: f32[32,2], index: 6, kind: input, shape index: {}]   ;;  %s2485_s7 = inlined_call_operand.vmem [shape: f32[32,1], index: 7, kind: input, shape index: {}]   ;;  %s2486_s8 = inlined_call_operand.hbm [shape: f32[2,32,576], index: 8, kind: output, shape index: {}]  }
   0x1   :  { %15 = vsyncpa [#allocation3 + $0x1], 0  ;;  %s1887_s27 = smov 0   ;;  %s1889_s28 = smov 0  }
   0x2   :  { %s1891_s29 = smov 0   ;;  %s1893_s30 = smov 0  }
   0x3 LB: > { %s1908_s9 = sadd.s32 4294967295, %s1832_s30   ;;  %s1392_s10 = sadd.s32 4294967294, %s1832_s30   ;;  %s1832_s30 = sphi %s1893_s30, %s2494_s30   ;;  %s1828_s29 = sphi %s1891_s29, %s2493_s29   ;;  %s1824_s28 = sphi %s1889_s28, %s2492_s28   ;;  %s1820_s27 = sphi %s1887_s27, %s2491_s27  }
   0x4   : > { %s1912_s11 = sadd.s32 1, %s1832_s30   ;;  %s206_s12 = sadd.s32 1, %s1828_s29 }
   0x5   : > { %s203_s13 = ssub.s32 %s1832_s30, %s1912_s11  ;;  %p216_p0 = scmp.ne.s32.totalorder %s1828_s29, %s1824_s28 }
   0x6   : > { %p204_p1 = scmp.eq.s32.totalorder %s203_s13, 0  ;;  %p217_p2 = scmp.eq.s32.totalorder %s1908_s9, 1 }
   0x7   : > { %p222_p3 = scmp.ne.s32.totalorder %s1824_s28, %s1820_s27  ;;  %p223_p4 = scmp.eq.s32.totalorder %s1392_s10, 1 }
   0x8   : > { %s1923_s14 = scalar_select %p204_p1, %s1828_s29, %s206_s12  }
   0x9   : > { %p1925_p5 = por %p217_p2, %p216_p0  ;;  %p1929_p6 = por %p223_p4, %p222_p3 }
   0xa   : > { %p1395_p7 = scmp.ge.s32.totalorder %s1832_s30, 1  ;;  %p275_p8 = scmp.lt.s32.totalorder %s1832_s30, 3 }
   0xc   : > { %p276_p9 = pnand %p1395_p7, %p275_p8 }
   0xd   : > { %v360_v0 = vld [vmem:[%s2480_s2 + $0x80] sm:$0xff] (!%p276_p9)  ;;  %v361_v1 = vld [vmem:[%s2480_s2 + $0x88] sm:$0xff] (!%p276_p9)  ;;  %v362_v11 = vld [vmem:[%s2480_s2 + $0x90] sm:$0xff] (!%p276_p9)  ;;  %p314_p10 = scmp.lt.s32.totalorder (!%p276_p9), %s1908_s9, 1  ;;  %vm416_vm0 = vcmask (!%p276_p9), 523264   ;;  %vm1835_vm1 = vmmov (!%p276_p9), 0  }
   0xe   : > { %279 = sbr.rel (%p276_p9) target bundleno = 1001 (0x3e9), region = 52  ;;  %v392_v2 = vld [vmem:[%s2480_s2 + $0x180] sm:$0xff] (!%p276_p9)  ;;  %v1599_v3 = vpack.c.bf16 (!%p276_p9), %v361_v1, %v360_v0  ;;  %v393_v4 = vld [vmem:[%s2480_s2 + $0x188] sm:$0xff] (!%p276_p9)  ;;  %v363_v13 = vld [vmem:[%s2480_s2 + $0x98] sm:$0xff] (!%p276_p9)  ;;  %vm691_vm2 = vcmask (!%p276_p9), 261120   ;;  %vm796_vm3 = vcmask (!%p276_p9), 15360  }
   0xf   : > { %v344_v5 = vld [vmem:[%s2480_s2] sm:$0xff] (!%p276_p9)  ;;  %v345_v6 = vld [vmem:[%s2480_s2 + $0x8] sm:$0xff] (!%p276_p9)  ;;  %v1631_v7 = vpack.c.bf16 (!%p276_p9), %v393_v4, %v392_v2  ;;  %v394_v14 = vld [vmem:[%s2480_s2 + $0x190] sm:$0xff] (!%p276_p9)  ;;  %v1603_v16 = vpack.c.bf16 (!%p276_p9), %v363_v13, %v362_v11  ;;  %vm809_vm5 = vcmask (!%p276_p9), 1041408   ;;  %vm945_vm6 = vcmask (!%p276_p9), 1040384   ;;  %s311_s22 = sand.u32 (!%p276_p9), 1, %s1824_s28  }
  0x10   : > { %v1601_v8 = vpack.c.bf16 (!%p276_p9), %v345_v6, %v344_v5  ;;  %v376_v9 = vld [vmem:[%s2480_s2 + $0x100] sm:$0xff] (!%p276_p9)  ;;  %v377_v10 = vld [vmem:[%s2480_s2 + $0x108] sm:$0xff] (!%p276_p9)  ;;  %1600 = vmatprep.subr.bf16.mxu0 (!%p276_p9), %v1599_v3  ;;  %v395_v15 = vld [vmem:[%s2480_s2 + $0x198] sm:$0xff] (!%p276_p9)  ;;  %vm1838_vm7 = vmmov (!%p276_p9), 1   ;;  %vm932_vm9 = vcmask (!%p276_p9), 72704   ;;  %s1703_s10 = smul.u32 (!%p276_p9), 160, %s311_s22 }
  0x11   : > { %v1633_v12 = vpack.c.bf16 (!%p276_p9), %v377_v10, %v376_v9  ;;  %1632 = vmatprep.subr.bf16.mxu1 (!%p276_p9), %v1631_v7  ;;  %v1635_v17 = vpack.c.bf16 (!%p276_p9), %v395_v15, %v394_v14  ;;  %v346_v18 = vld [vmem:[%s2480_s2 + $0x10] sm:$0xff] (!%p276_p9)  ;;  %v347_v19 = vld [vmem:[%s2480_s2 + $0x18] sm:$0xff] (!%p276_p9)  ;;  %v364_v23 = vld [vmem:[%s2480_s2 + $0xa0] sm:$0xff] (!%p276_p9)  ;;  %s2437_s17 = scalar_lea.sflag (!%p276_p9), [#allocation3], %s311_s22  ;;  %s1839_s20 = smov (!%p276_p9), [#allocation2]  }
  0x12   : > { %1602 = vmatpush3.bf16.msra.mxu0 (!%p276_p9), %v1601_v8  ;;  %v378_v20 = vld [vmem:[%s2480_s2 + $0x110] sm:$0xff] (!%p276_p9)  ;;  %v1605_v21 = vpack.c.bf16 (!%p276_p9), %v347_v19, %v346_v18  ;;  %v379_v22 = vld [vmem:[%s2480_s2 + $0x118] sm:$0xff] (!%p276_p9)  ;;  %v365_v24 = vld [vmem:[%s2480_s2 + $0xa8] sm:$0xff] (!%p276_p9)  ;;  %s1774_s23 = sshll.u32 (!%p276_p9), %s1839_s20, 4  ;;  %s1775_s23 = int_to_ptr.vmem [resolvable:$false] %s1774_s23 }
  0x13   : > { %1634 = vmatpush3.bf16.msra.mxu1 (!%p276_p9), %v1633_v12  ;;  %1604 = vmatprep.subr.bf16.mxu0 (!%p276_p9), %v1603_v16  ;;  %v1637_v25 = vpack.c.bf16 (!%p276_p9), %v379_v22, %v378_v20  ;;  %v1607_v26 = vpack.c.bf16 (!%p276_p9), %v365_v24, %v364_v23  ;;  %v396_v27 = vld [vmem:[%s2480_s2 + $0x1a0] sm:$0xff] (!%p276_p9)  ;;  %v397_v28 = vld [vmem:[%s2480_s2 + $0x1a8] sm:$0xff] (!%p276_p9)  ;;  %v366_v35 = vld [vmem:[%s2480_s2 + $0xb0] sm:$0xff] (!%p276_p9)  ;;  %s1776_s24 = scalar_lea.vmem (!%p276_p9), %s1775_s23, 5120 }
  0x14   : > { %1636 = vmatprep.subr.bf16.mxu1 (!%p276_p9), %v1635_v17  ;;  %v348_v29 = vld [vmem:[%s2480_s2 + $0x20] sm:$0xff] (!%p276_p9)  ;;  %v1639_v30 = vpack.c.bf16 (!%p276_p9), %v397_v28, %v396_v27  ;;  %v349_v31 = vld [vmem:[%s2480_s2 + $0x28] sm:$0xff] (!%p276_p9)  ;;  %v367_v36 = vld [vmem:[%s2480_s2 + $0xb8] sm:$0xff] (!%p276_p9) }
  0x15   : > { %v380_v32 = vld [vmem:[%s2480_s2 + $0x120] sm:$0xff]  ;;  %v381_v33 = vld [vmem:[%s2480_s2 + $0x128] sm:$0xff]  ;;  %v1609_v34 = vpack.c.bf16 %v349_v31, %v348_v29  ;;  %v398_v37 = vld [vmem:[%s2480_s2 + $0x1b0] sm:$0xff]  ;;  %v1611_v39 = vpack.c.bf16 %v367_v36, %v366_v35  ;;  %s2038_s18 = scalar_select %p314_p10, %s1908_s9, 1 }
  0x16   : > { %1606 = vmatpush3.bf16.msra.mxu0 %v1605_v21  ;;  %v1641_v38 = vpack.c.bf16 %v381_v33, %v380_v32  ;;  %v399_v40 = vld [vmem:[%s2480_s2 + $0x1b8] sm:$0xff]  ;;  %v350_v41 = vld [vmem:[%s2480_s2 + $0x30] sm:$0xff]  ;;  %v368_v46 = vld [vmem:[%s2480_s2 + $0xc0] sm:$0xff] }
  0x17   : > { %1638 = vmatpush3.bf16.msra.mxu1 %v1637_v25  ;;  %1608 = vmatprep.subr.bf16.mxu0 %v1607_v26  ;;  %v351_v42 = vld [vmem:[%s2480_s2 + $0x38] sm:$0xff]  ;;  %v1643_v43 = vpack.c.bf16 %v399_v40, %v398_v37  ;;  %v382_v44 = vld [vmem:[%s2480_s2 + $0x130] sm:$0xff]  ;;  %v369_v47 = vld [vmem:[%s2480_s2 + $0xc8] sm:$0xff]  ;;  %s1704_s25 = smul.u32 160, %s2038_s18  ;;  %s2370_s18 = scalar_lea.vmem [#allocation2], %s1703_s10 }
  0x18   : > { %1640 = vmatprep.subr.bf16.mxu1 %v1639_v30  ;;  %v383_v45 = vld [vmem:[%s2480_s2 + $0x138] sm:$0xff]  ;;  %v400_v48 = vld [vmem:[%s2480_s2 + $0x1c0] sm:$0xff]  ;;  %v401_v49 = vld [vmem:[%s2480_s2 + $0x1c8] sm:$0xff]  ;;  %v1613_v50 = vpack.c.bf16 %v351_v42, %v350_v41  ;;  %v1615_v52 = vpack.c.bf16 %v369_v47, %v368_v46  ;;  %s1318_s12 = sshll.u32 %s2370_s18, 4  ;;  %s2429_s12 = int_to_ptr.vmem [resolvable:$true] %s1318_s12 }
  0x19   : > { %v1645_v51 = vpack.c.bf16 %v383_v45, %v382_v44  ;;  %v352_v53 = vld [vmem:[%s2480_s2 + $0x40] sm:$0xff]  ;;  %v353_v54 = vld [vmem:[%s2480_s2 + $0x48] sm:$0xff]  ;;  %v1647_v56 = vpack.c.bf16 %v401_v49, %v400_v48  ;;  %v370_v58 = vld [vmem:[%s2480_s2 + $0xd0] sm:$0xff]  ;;  %s2097_s21 = scalar_lea.vmem %s2478_s0, %s1704_s25  ;;  %s2356_s26 = scalar_lea.vmem %s2479_s1, %s1704_s25 }
  0x1a   : > { %1610 = vmatpush3.bf16.msra.mxu0 %v1609_v34  ;;  %v384_v55 = vld [vmem:[%s2480_s2 + $0x140] sm:$0xff]  ;;  %v385_v57 = vld [vmem:[%s2480_s2 + $0x148] sm:$0xff]  ;;  %v371_v59 = vld [vmem:[%s2480_s2 + $0xd8] sm:$0xff]  ;;  %v1617_v62 = vpack.c.bf16 %v353_v54, %v352_v53  ;;  %s1705_s25 = smul.u32 2560, %s1908_s9  ;;  %s1770_s19 = scalar_lea.vmem %s2429_s12, 2560 }
  0x1b   : > { %1642 = vmatpush3.bf16.msra.mxu1 %v1641_v38  ;;  %1612 = vmatprep.subr.bf16.mxu0 %v1611_v39  ;;  %v402_v60 = vld [vmem:[%s2480_s2 + $0x1d0] sm:$0xff]  ;;  %v403_v61 = vld [vmem:[%s2480_s2 + $0x1d8] sm:$0xff]  ;;  %v1649_v63 = vpack.c.bf16 %v385_v57, %v384_v55  ;;  %v1619_v0 = vpack.c.bf16 %v371_v59, %v370_v58  ;;  %v372_v6 = vld [vmem:[%s2480_s2 + $0xe0] sm:$0xff]  ;;  %p1771_p11 = scmp.ne.s32.totalorder %s2429_s12, %s1770_s19  ;;  %p1777_p0 = scmp.lt.s32.totalorder %s2429_s12, %s1775_s23 }
  0x1c   : > { %1644 = vmatprep.subr.bf16.mxu1 %v1643_v43  ;;  %v354_v1 = vld [vmem:[%s2480_s2 + $0x50] sm:$0xff]  ;;  %v355_v2 = vld [vmem:[%s2480_s2 + $0x58] sm:$0xff]  ;;  %v1651_v4 = vpack.c.bf16 %v403_v61, %v402_v60  ;;  %v373_v7 = vld [vmem:[%s2480_s2 + $0xe8] sm:$0xff]  ;;  %s2427_s13 = scalar_lea.hbm %s2486_s8, %s1705_s25  ;;  %p1778_p1 = scmp.lt.s32.totalorder %s1776_s24, %s1770_s19 }
  0x1d   : > { %v386_v3 = vld [vmem:[%s2480_s2 + $0x150] sm:$0xff]  ;;  %v387_v5 = vld [vmem:[%s2480_s2 + $0x158] sm:$0xff]  ;;  %v404_v8 = vld [vmem:[%s2480_s2 + $0x1e0] sm:$0xff]  ;;  %v1621_v10 = vpack.c.bf16 %v355_v2, %v354_v1  ;;  %v1623_v14 = vpack.c.bf16 %v373_v7, %v372_v6  ;;  %v1836_v1 = vmov 0.0   ;;  %p1772_p12 = pnand %p1771_p11, %p1925_p5 }
  0x1e   : > { %1614 = vmatpush3.bf16.msra.mxu0 %v1613_v50  ;;  %v405_v9 = vld [vmem:[%s2480_s2 + $0x1e8] sm:$0xff]  ;;  %v356_v11 = vld [vmem:[%s2480_s2 + $0x60] sm:$0xff]  ;;  %v1653_v13 = vpack.c.bf16 %v387_v5, %v386_v3  ;;  %v2118_v17 = vld [vmem:[%s2097_s21 + $0x18] sm:$0xff]  ;;  %v1837_v3 = vmov 0   ;;  %p1779_p2 = por %p1778_p1, %p1777_p0 }
  0x1f   : > { %1646 = vmatpush3.bf16.msra.mxu1 %v1645_v51  ;;  %1616 = vmatprep.subr.bf16.mxu0 %v1615_v52  ;;  %v357_v12 = vld [vmem:[%s2480_s2 + $0x68] sm:$0xff]  ;;  %v388_v15 = vld [vmem:[%s2480_s2 + $0x160] sm:$0xff]  ;;  %v1655_v18 = vpack.c.bf16 %v405_v9, %v404_v8  ;;  %v374_v20 = vld [vmem:[%s2480_s2 + $0xf0] sm:$0xff]  ;;  %p1773_p13 = pneg %p1772_p12 }
  0x20   : > { %1648 = vmatprep.subr.bf16.mxu1 %v1647_v56  ;;  %v2115_v16 = vld [vmem:[%s2097_s21 + $0x8] sm:$0xff]  ;;  %v375_v21 = vld [vmem:[%s2480_s2 + $0xf8] sm:$0xff]  ;;  %v406_v22 = vld [vmem:[%s2480_s2 + $0x1f0] sm:$0xff]  ;;  %578 = vmatprep.mubr.f32.mxu1 %v2118_v17  ;;  %v1625_v24 = vpack.c.bf16 %v357_v12, %v356_v11 }
  0x21   : > { %v389_v19 = vld [vmem:[%s2480_s2 + $0x168] sm:$0xff]  ;;  %493 = vmatprep.mubr.f32.mxu0 %v2115_v16  ;;  %v407_v23 = vld [vmem:[%s2480_s2 + $0x1f8] sm:$0xff]  ;;  %v1627_v26 = vpack.c.bf16 %v375_v21, %v374_v20  ;;  %v358_v27 = vld [vmem:[%s2480_s2 + $0x70] sm:$0xff]  ;;  %1752 = vset.pattern.permute.xlu0 %v1837_v3  ;;  %p1780_p3 = pnand %p1779_p2, %p1773_p13 }
  0x22   : > { %1618 = vmatpush3.bf16.msra.mxu0 %v1617_v62  ;;  %v1657_v25 = vpack.c.bf16 %v389_v19, %v388_v15  ;;  %v359_v28 = vld [vmem:[%s2480_s2 + $0x78] sm:$0xff]  ;;  %v390_v29 = vld [vmem:[%s2480_s2 + $0x170] sm:$0xff]  ;;  %v1659_v30 = vpack.c.bf16 %v407_v23, %v406_v22  ;;  %v408_v32 = vld [vmem:[%s2480_s2 + $0x200] sm:$0xff]  ;;  %1753 = vset.pattern.permute.xlu1 %v1837_v3 }
  0x23   : > { %1650 = vmatpush3.bf16.msra.mxu1 %v1649_v63  ;;  %1620 = vmatprep.subr.bf16.mxu0 %v1619_v0  ;;  %v391_v31 = vld [vmem:[%s2480_s2 + $0x178] sm:$0xff]  ;;  %v409_v33 = vld [vmem:[%s2480_s2 + $0x208] sm:$0xff]  ;;  %v1629_v34 = vpack.c.bf16 %v359_v28, %v358_v27  ;;  %v410_v37 = vld [vmem:[%s2480_s2 + $0x210] sm:$0xff]  ;;  %v1834_v0 = vmov 0.0|0.0  }
  0x24   : > { %1652 = vmatprep.subr.bf16.mxu1 %v1651_v4  ;;  %v1661_v35 = vpack.c.bf16 %v391_v31, %v390_v29  ;;  %v1663_v36 = vpack.c.bf16 %v409_v33, %v408_v32  ;;  %v411_v38 = vld [vmem:[%s2480_s2 + $0x218] sm:$0xff]  ;;  %v2162_v39 = vld [vmem:[%s2097_s21] sm:$0xff]  ;;  %v2165_v40 = vld [vmem:[%s2097_s21 + $0x10] sm:$0xff] }
  0x25   : > { %v2168_v41 = vld [vmem:[%s2097_s21 + $0x30] sm:$0xff]  ;;  %v2171_v42 = vld [vmem:[%s2097_s21 + $0x40] sm:$0xff]  ;;  %v1667_v43 = vpack.c.bf16 %v411_v38, %v410_v37  ;;  %v413_v45 = vld [vmem:[%s2480_s2 + $0x228] sm:$0xff] }
  0x26   : > { %1622 = vmatpush3.bf16.msra.mxu0 %v1621_v10  ;;  %v412_v44 = vld [vmem:[%s2480_s2 + $0x220] sm:$0xff]  ;;  %v2182_v46 = vld [vmem:[%s2097_s21 + $0x28] sm:$0xff]  ;;  %v2187_v47 = vld [vmem:[%s2097_s21 + $0x38] sm:$0xff] }
  0x27   : > { %1654 = vmatpush3.bf16.msra.mxu1 %v1653_v13  ;;  %1624 = vmatprep.subr.bf16.mxu0 %v1623_v14  ;;  %v2190_v48 = vld [vmem:[%s2097_s21 + $0x58] sm:$0xff]  ;;  %v2193_v49 = vld [vmem:[%s2097_s21 + $0x68] sm:$0xff]  ;;  %v1671_v50 = vpack.c.bf16 %v413_v45, %v412_v44  ;;  %v414_v51 = vld [vmem:[%s2480_s2 + $0x230] sm:$0xff] }
  0x28   : > { %1656 = vmatprep.subr.bf16.mxu1 %v1655_v18  ;;  %v415_v52 = vld [vmem:[%s2480_s2 + $0x238] sm:$0xff]  ;;  %v2204_v53 = vld [vmem:[%s2097_s21 + $0x50] sm:$0xff]  ;;  %v2209_v54 = vld [vmem:[%s2097_s21 + $0x60] sm:$0xff] }
  0x29   : > { %v2212_v55 = vld [vmem:[%s2097_s21 + $0x80] sm:$0xff]  ;;  %v2215_v56 = vld [vmem:[%s2097_s21 + $0x90] sm:$0xff]  ;;  %v1675_v57 = vpack.c.bf16 %v415_v52, %v414_v51  ;;  %v2220_v58 = vld [vmem:[%s2097_s21 + $0x78] sm:$0xff] }
  0x2a   : > { %1626 = vmatpush3.bf16.msra.mxu0 %v1625_v24  ;;  %v2225_v59 = vld [vmem:[%s2097_s21 + $0x88] sm:$0xff]  ;;  %v2228_v60 = vld [vmem:[%s2097_s21 + $0x20] sm:$0xff]  ;;  %v2238_v62 = vld [vmem:[%s2097_s21 + $0x70] sm:$0xff] }
  0x2b   : > { %1658 = vmatpush3.bf16.msra.mxu1 %v1657_v25  ;;  %1628 = vmatprep.subr.bf16.mxu0 %v1627_v26  ;;  %v2233_v61 = vld [vmem:[%s2097_s21 + $0x48] sm:$0xff]  ;;  %v2245_v63 = vld [vmem:[%s2097_s21 + $0x98] sm:$0xff]  ;;  %v685_v2 = vld [vmem:[%s2483_s5] sm:$0x3] }
  0x2c   : > { %1660 = vmatprep.subr.bf16.mxu1 %v1659_v30  ;;  %688 = vperm.xlu0 %1752, %v685_v2   ;;  %v772_v4 = vld [vmem:[%s2485_s7] sm:$0xff]  ;;  %v775_v5 = vld [vmem:[%s2485_s7 + $0x18] sm:$0xff]  ;;  %vm2295_vm8 = vmpackc.low %vm945_vm6, %vm1838_vm7 }
  0x2d   : > { %v684_v2 = vld [vmem:[%s2482_s4] sm:$0x3] }
  0x2e   : > { %1630 = vmatpush3.bf16.msra.mxu0 %v1629_v34  ;;  %v768_v3 = vld [vmem:[%s2484_s6] sm:$0xff] }
  0x2f   : > { %1662 = vmatpush3.bf16.msra.mxu1 %v1661_v35  ;;  %1664 = vmatprep.subr.bf16.mxu0 %v1663_v36 }
  0x30   : > { %1679 = vmatprep.subr.bf16.mxu1 %v1834_v0  ;;  %778 = vperm.xlu0 %1752, %v772_v4   ;;  %v773_v4 = vld [vmem:[%s2485_s7 + $0x8] sm:$0xff] }
  0x31   : > { %494 = vmatmul.mubr.f32.vlgmr.msra.gmra.mrb[0].mxu0 %v2162_v39  ;;  %783 = vperm.xlu1 %1753, %v773_v4  }
  0x32   : > { %579 = vmatmul.mubr.f32.vlgmr.msra.gmra.mrb[0].mxu1 %v2165_v40  ;;  %1666 = vmatpush3.bf16.msra.mxu0 %v1663_v36 }
  0x33   : > { %498 = vmatprep.mubr.f32.mxu0 %v2168_v41  ;;  %583 = vmatprep.mubr.f32.mxu1 %v2171_v42 }
  0x34   : > { %1668 = vmatprep.subr.bf16.mxu0 %v1667_v43  ;;  %793 = vperm.xlu0 %1752, %v775_v5  }
  0x35   : > { %499 = vmatmul.mubr.f32.gmra.mrb[2].mxu0 %v2182_v46 }
  0x36   : > { %584 = vmatmul.mubr.f32.gmra.mrb[2].mxu1 %v2187_v47  ;;  %1670 = vmatpush3.bf16.msra.mxu0 %v1667_v43 }
  0x37   : > { %503 = vmatprep.mubr.f32.mxu0 %v2190_v48  ;;  %588 = vmatprep.mubr.f32.mxu1 %v2193_v49 }
  0x38   : > { %1672 = vmatprep.subr.bf16.mxu0 %v1671_v50 }
  0x39   : > { %504 = vmatmul.mubr.f32.gmra.mrb[4].mxu0 %v2204_v53 }
  0x3a   : > { %589 = vmatmul.mubr.f32.gmra.mrb[4].mxu1 %v2209_v54  ;;  %1674 = vmatpush3.bf16.msra.mxu0 %v1671_v50 }
  0x3b   : > { %508 = vmatprep.mubr.f32.mxu0 %v2212_v55  ;;  %593 = vmatprep.mubr.f32.mxu1 %v2215_v56 }
  0x3c   : > { %1676 = vmatprep.subr.bf16.mxu0 %v1675_v57 }
  0x3d   : > { %509 = vmatmul.mubr.f32.gmra.mrb[6].mxu0 %v2220_v58 }
  0x3e   : > { %594 = vmatmul.mubr.f32.gmra.mrb[6].mxu1 %v2225_v59  ;;  %1678 = vmatpush3.bf16.msra.mxu0 %v1675_v57 }
  0x3f   : > { %1564 = vmatprep.mubr.msk.f32.mxu0 %vm416_vm0, %v2228_v60  ;;  %1578 = vmatprep.mubr.msk.f32.mxu1 %vm1835_vm1, %v1836_v1 }
  0x41   : > { %1565 = vmatmul.mubr.msk.f32.vlgmr.msra.gmra.mrb[8].mxu0 %vm416_vm0, %v2233_v61 }
  0x42   : > { %1567 = vmatprep.mubr.msk.f32.mxu0 %vm416_vm0, %v2238_v62 }
  0x45   : > { %1568 = vmatmul.mubr.msk.f32.gmra.mrb[10].mxu0 %vm416_vm0, %v2245_v63 }
  0x46   : > { %1025 = vmatprep.mubr.f32.mxu0 %v1836_v1 }
  0xab   : > { %v689_v5 = vpop.permute.xlu0 %688 }
 0x104   : > { %v1464_v6 = vpop.f32.mrb[0].mxu0 }
 0x105   : > { %v1508_v7 = vpop.f32.mrb[0].mxu1  ;;  %v1465_v8 = vpop.f32.mrb[1].mxu0 }
 0x106   : > { %v1466_v9 = vadd.f32 %v1465_v8, %v1464_v6  ;;  %v1509_v10 = vpop.f32.mrb[1].mxu1 }
 0x107   : > { %v1510_v11 = vadd.f32 %v1509_v10, %v1508_v7 }
 0x108   : > { %v1467_v12 = vpop.f32.mrb[2].mxu0 }
 0x109   : > { %v1511_v13 = vpop.f32.mrb[2].mxu1  ;;  %v1468_v14 = vpop.f32.mrb[3].mxu0  ;;  %v581_v15 = vadd.f32 %v1510_v11, %v1466_v9  ;;  %v769_v11 = vld [vmem:[%s2484_s6 + $0x8] sm:$0xff] }
 0x10a   : > { %v1469_v18 = vadd.f32 %v1468_v14, %v1467_v12  ;;  %v1512_v19 = vpop.f32.mrb[3].mxu1  ;;  %v770_v12 = vld [vmem:[%s2484_s6 + $0x10] sm:$0xff]  ;;  %v923_v14 = vld [vmem:[%s2481_s3 + $0x8] sm:$0xff] }
 0x10b   : > { %v1513_v20 = vadd.f32 %v1512_v19, %v1511_v13  ;;  %v771_v13 = vld [vmem:[%s2484_s6 + $0x18] sm:$0xff] }
 0x10c   : > { %v1470_v21 = vpop.f32.mrb[4].mxu0 }
 0x10d   : > { %v1514_v22 = vpop.f32.mrb[4].mxu1  ;;  %v1471_v23 = vpop.f32.mrb[5].mxu0  ;;  %v586_v24 = vadd.f32 %v1513_v20, %v1469_v18  ;;  %v925_v18 = vld [vmem:[%s2481_s3 + $0x18] sm:$0xff] }
 0x10e   : > { %v1472_v25 = vadd.f32 %v1471_v23, %v1470_v21  ;;  %v1515_v26 = vpop.f32.mrb[5].mxu1  ;;  %v930_v21 = vld [vmem:[%s2481_s3 + $0x40] sm:$0x1] }
 0x10f   : > { %v1516_v27 = vadd.f32 %v1515_v26, %v1514_v22  ;;  %v922_v22 = vld [vmem:[%s2481_s3] sm:$0xff]  ;;  %v1691_v23 = vpack.c.bf16 %v930_v21, %v925_v18  ;;  %v929_v26 = vld [vmem:[%s2481_s3 + $0x38] sm:$0x1] }
 0x110   : > { %v1473_v28 = vpop.f32.mrb[6].mxu0 }
 0x111   : > { %v1517_v29 = vpop.f32.mrb[6].mxu1  ;;  %v1474_v30 = vpop.f32.mrb[7].mxu0  ;;  %v591_v31 = vadd.f32 %v1516_v27, %v1472_v25  ;;  %v924_v25 = vld [vmem:[%s2481_s3 + $0x10] sm:$0xff] }
 0x112   : > { %v1475_v32 = vadd.f32 %v1474_v30, %v1473_v28  ;;  %v1518_v33 = vpop.f32.mrb[7].mxu1  ;;  %v1694_v28 = vpack.c.bf16 %v929_v26, %v924_v25  ;;  %v931_v30 = vld [vmem:[%s2481_s3 + $0x48] sm:$0x1]  ;;  %v1247_v25 = vld [vmem:[%s2356_s26 + $0x18] sm:$0xff] }
 0x113   : > { %v1519_v34 = vadd.f32 %v1518_v33, %v1517_v29  ;;  %v926_v29 = vld [vmem:[%s2481_s3 + $0x20] sm:$0xff]  ;;  %v779_v33 = vpop.permute.xlu0 %778 }
 0x114   : > { %v1566_v35 = vpop.f32.mrb[8].mxu0 }
 0x115   : > { %v671_v36 = vadd.f32 %v1566_v35, %v586_v24  ;;  %v665_v37 = vpop.f32.mrb[9].mxu0  ;;  %v596_v38 = vadd.f32 %v1519_v34, %v1475_v32  ;;  %v927_v24 = vld [vmem:[%s2481_s3 + $0x28] sm:$0x1]  ;;  %v784_v32 = vpop.permute.xlu1 %783 }
 0x116   : > { %v666_v43 = vadd.f32 %v665_v37, %v581_v15  ;;  %v928_v15 = vld [vmem:[%s2481_s3 + $0x30] sm:$0x1]  ;;  %v1688_v27 = vpack.c.bf16 %v927_v24, %v922_v22 }
 0x117   : > { %v1685_v19 = vpack.c.bf16 %v928_v15, %v923_v14  ;;  %v1244_v15 = vld [vmem:[%s2356_s26] sm:$0xff] }
 0x118   : > { %v1680_v44 = vpack.c.bf16 %v671_v36, %v666_v43  ;;  %v1569_v45 = vpop.f32.mrb[10].mxu0 }
 0x119   : > { %v681_v50 = vadd.f32 %v1569_v45, %v596_v38  ;;  %v675_v51 = vpop.f32.mrb[11].mxu0  ;;  %1687 = vmatprep.subr.msk.bf16.mxu0 %vm2295_vm8, %v1685_v19  ;;  %v1246_v19 = vld [vmem:[%s2356_s26 + $0x10] sm:$0xff] }
 0x11a   : > { %v676_v52 = vadd.f32 %v675_v51, %v591_v31  ;;  %1681 = vmatpush3.bf16.msra.mxu1 %v1680_v44  ;;  %1690 = vmatpush1.bf16.msk.msra.mxu0 %vm2295_vm8, %v1688_v27  ;;  %v1697_v31 = vpack.c.bf16 %v931_v30, %v926_v29 }
 0x11b   : > { %1682 = vmatprep.subr.bf16.mxu1 %v1834_v0  ;;  %v774_v0 = vld [vmem:[%s2485_s7 + $0x10] sm:$0xff] }
 0x11c   : > { %v1683_v57 = vpack.c.bf16 %v681_v50, %v676_v52  ;;  %788 = vperm.xlu1 %1753, %v774_v0   ;;  %1699 = vmatprep.subr.msk.bf16.mxu0 %vm2295_vm8, %v1697_v31  ;;  %v794_v50 = vpop.permute.xlu0 %793 }
 0x11e   : > { %1684 = vmatpush3.bf16.msra.mxu1 %v1683_v57 }
 0x121   : > { %1579 = vmatmul.mubr.msk.f32.vlgmr.msra.gmra.mrb[8].mxu1 %vm691_vm2, %v684_v2 }
 0x122   : > { %1583 = vmatprep.mubr.msk.f32.mxu1 %vm796_vm3, %v768_v3 }
 0x19b   : > { %v789_v43 = vpop.permute.xlu1 %788 }
 0x1f4   : > { %v761_v6 = vpop.f32.mrb[8].mxu1 }
 0x1f5   : > { %v762_v7 = vadd.f32 %v761_v6, %v689_v5  ;;  %v1580_v8 = vpop.f32.mrb[9].mxu1 }
 0x1f7   : > { %vm765_vm4 = vcmp.gt.f32.partialorder %v762_v7, 0.0  ;;  %v766_v9 = vmul.f32 0.1, %v762_v7 }
 0x1f9   : > { %v767_v10 = vsel %vm765_vm4, %v762_v7, %v766_v9 }
 0x1fa   : > { %1581 = vmatprep.subr.msk.mxu1 %vm809_vm5, %v767_v10 }
 0x1fb   : > { %1582 = vmatpush3.msk.msra.mxu1 %vm809_vm5, %v767_v10 }
 0x1fc   : > { %1584 = vmatmul.mubr.msk.f32.vlgmr.msra.gmra.mrb[10].mxu1 %vm796_vm3, %v769_v11  ;;  %1693 = vmatprep.subr.msk.bf16.mxu1 %vm2295_vm8, %v1691_v23  ;;  %v1245_v23 = vld [vmem:[%s2356_s26 + $0x8] sm:$0xff] }
 0x1fd   : > { %1586 = vmatprep.mubr.msk.f32.mxu1 %vm796_vm3, %v770_v12  ;;  %1696 = vmatpush1.bf16.msk.msra.mxu1 %vm2295_vm8, %v1694_v28 }
 0x200   : > { %1587 = vmatmul.mubr.msk.f32.gmra.mrb[12].mxu1 %vm796_vm3, %v771_v13 }
 0x201   : > { %1114 = vmatprep.mubr.f32.mxu1 %v1836_v1 }
 0x2cf   : > { %v1585_v34 = vpop.f32.mrb[10].mxu1 }
 0x2d0   : > { %v879_v35 = vpop.f32.mrb[11].mxu1  ;;  %v885_v36 = vadd.f32 %v1585_v34, %v784_v32 }
 0x2d1   : > { %v880_v37 = vadd.f32 %v879_v35, %v779_v33  ;;  %v1249_v33 = vld [vmem:[%s2356_s26 + $0x28] sm:$0xff]  ;;  %v1250_v35 = vld [vmem:[%s2356_s26 + $0x30] sm:$0xff] }
 0x2d2   : > { %v1409_v38 = vmul.f32 -1.442695, %v885_v36 }
 0x2d3   : > { %v1408_v44 = vmul.f32 -1.442695, %v880_v37  ;;  %v1588_v45 = vpop.f32.mrb[12].mxu1  ;;  %v1252_v37 = vld [vmem:[%s2356_s26 + $0x40] sm:$0xff] }
 0x2d4   : > { %1754 = vpow2.f32 %v1409_v38  ;;  %v889_v51 = vpop.f32.mrb[13].mxu1  ;;  %v895_v52 = vadd.f32 %v1588_v45, %v794_v50 }
 0x2d5   : > { %1756 = vpow2.f32 %v1408_v44  ;;  %v890_v57 = vadd.f32 %v889_v51, %v789_v43  ;;  %v1254_v51 = vld [vmem:[%s2356_s26 + $0x50] sm:$0xff] }
 0x2d6   : > { %v1411_v3 = vmul.f32 -1.442695, %v895_v52 }
 0x2d7   : > { %v1410_v2 = vmul.f32 -1.442695, %v890_v57  ;;  %v1256_v57 = vld [vmem:[%s2356_s26 + $0x60] sm:$0xff] }
 0x2d9   : > { %1758 = vpow2.f32 %v1410_v2 }
 0x2da   : > { %1760 = vpow2.f32 %v1411_v3  ;;  %v1255_v3 = vld [vmem:[%s2356_s26 + $0x58] sm:$0xff] }
 0x2de   : > { %v1755_v4 = vpop.eup %1754 }
 0x2df   : > { %v1757_v0 = vpop.eup %1756  ;;  %v911_v6 = vadd.f32 1.0, %v1755_v4 }
 0x2e0   : > { %v910_v5 = vadd.f32 1.0, %v1757_v0  ;;  %v1257_v0 = vld [vmem:[%s2356_s26 + $0x68] sm:$0xff] }
 0x2e2   : > { %1762 = vrcp.f32 %v910_v5 }
 0x2e3   : > { %v1759_v7 = vpop.eup %1758  ;;  %1764 = vrcp.f32 %v911_v6 }
 0x2e4   : > { %v912_v8 = vadd.f32 1.0, %v1759_v7  ;;  %v1761_v9 = vpop.eup %1760 }
 0x2e5   : > { %v913_v10 = vadd.f32 1.0, %v1761_v9 }
 0x2e6   : > { %1766 = vrcp.f32 %v912_v8 }
 0x2e7   : > { %1768 = vrcp.f32 %v913_v10  ;;  %v1259_v10 = vld [vmem:[%s2356_s26 + $0x78] sm:$0xff] }
 0x2ec   : > { %v1763_v11 = vpop.eup %1762 }
 0x2ed   : > { %1414 = vmatmul.mubr.msk.f32.vlgmr.msra.gmra.mrb[12].mxu0 %vm932_vm9, %v1763_v11  ;;  %1420 = vmatmul.mubr.msk.f32.vlgmr.msra.gmra.mrb[14].mxu1 %vm932_vm9, %v1763_v11  ;;  %v1765_v12 = vpop.eup %1764 }
 0x2ee   : > { %1031 = vmatprep.mubr.f32.mxu0 %v1836_v1  ;;  %1120 = vmatprep.mubr.f32.mxu1 %v1836_v1 }
 0x2ef   : > { %1702 = vmatpush3.bf16.msk.msra.mxu0 %vm2295_vm8, %v1697_v31 }
 0x2f0   : > { %v1767_v13 = vpop.eup %1766 }
 0x2f1   : > { %1415 = vmatmul.mubr.msk.f32.gmra.mrb[14].mxu0 %vm932_vm9, %v1765_v12  ;;  %1421 = vmatmul.mubr.msk.f32.gmra.mrb[16].mxu1 %vm932_vm9, %v1765_v12  ;;  %v1769_v14 = vpop.eup %1768 }
 0x2f2   : > { %1037 = vmatprep.mubr.f32.mxu0 %v1836_v1  ;;  %1126 = vmatprep.mubr.f32.mxu1 %v1836_v1 }
 0x2f5   : > { %1416 = vmatmul.mubr.msk.f32.gmra.mrb[16].mxu0 %vm932_vm9, %v1767_v13  ;;  %1422 = vmatmul.mubr.msk.f32.gmra.mrb[18].mxu1 %vm932_vm9, %v1767_v13 }
 0x2f6   : > { %1043 = vmatprep.mubr.f32.mxu0 %v1836_v1  ;;  %1132 = vmatprep.mubr.f32.mxu1 %v1836_v1 }
 0x2f9   : > { %1417 = vmatmul.mubr.msk.f32.gmra.mrb[18].mxu0 %vm932_vm9, %v1769_v14  ;;  %1423 = vmatmul.mubr.msk.f32.gmra.mrb[20].mxu1 %vm932_vm9, %v1769_v14 }
 0x2fa   : > { %1593 = vmatprep.mubr.msk.f32.mxu0 %vm932_vm9, %v1763_v11 }
 0x2fd   : > { %1594 = vmatmul.mubr.msk.f32.vlgmr.msra.gmra.mrb[20].mxu0 %vm932_vm9, %v1765_v12  ;;  %v1261_v12 = vld [vmem:[%s2356_s26 + $0x88] sm:$0xff] }
 0x2fe   : > { %1596 = vmatprep.mubr.msk.f32.mxu0 %vm932_vm9, %v1767_v13 }
 0x301   : > { %1597 = vmatmul.mubr.msk.f32.gmra.mrb[22].mxu0 %vm932_vm9, %v1769_v14  ;;  %v1260_v14 = vld [vmem:[%s2356_s26 + $0x80] sm:$0xff] }
 0x3c0   : > { %v1027_v1 = vpop.f32.mrb[12].mxu0  ;;  %v1116_v18 = vpop.f32.mrb[14].mxu1 }
 0x3c1   : > { %v1224_v20 = vmul.f32 %v1027_v1, %v2162_v39  ;;  %v1226_v21 = vmul.f32 %v1116_v18, %v2165_v40  ;;  %v1029_v22 = vpop.f32.mrb[13].mxu0  ;;  %v1118_v24 = vpop.f32.mrb[15].mxu1  ;;  %v1251_v39 = vld [vmem:[%s2356_s26 + $0x38] sm:$0xff] }
 0x3c2   : > { %v1225_v26 = vmul.f32 %v1029_v22, %v2115_v16  ;;  %v1227_v27 = vmul.f32 %v1118_v24, %v2118_v17 }
 0x3c3   : > { %v1264_v28 = vadd.f32 %v1244_v15, %v1224_v20  ;;  %v1266_v29 = vadd.f32 %v1246_v19, %v1226_v21  ;;  %v1262_v15 = vld [vmem:[%s2356_s26 + $0x90] sm:$0xff] }
 0x3c4   : > { %v1265_v30 = vadd.f32 %v1245_v23, %v1225_v26  ;;  %v1267_v31 = vadd.f32 %v1247_v25, %v1227_v27  ;;  %v1033_v32 = vpop.f32.mrb[14].mxu0  ;;  %v1122_v34 = vpop.f32.mrb[16].mxu1  ;;  %v1253_v23 = vld [vmem:[%s2356_s26 + $0x48] sm:$0xff] }
 0x3c5   : > { %1284 = vst [vmem:[%s2370_s18] sm:$0xff] %v1264_v28  ;;  %1286 = vst [vmem:[%s2370_s18 + $0x10] sm:$0xff] %v1266_v29  ;;  %v1229_v16 = vmul.f32 %v1033_v32, %v2182_v46  ;;  %v1231_v17 = vmul.f32 %v1122_v34, %v2187_v47  ;;  %v1035_v40 = vpop.f32.mrb[15].mxu0  ;;  %v1124_v36 = vpop.f32.mrb[17].mxu1  ;;  %v1263_v29 = vld [vmem:[%s2356_s26 + $0x98] sm:$0xff] }
 0x3c6   : > { %1285 = vst [vmem:[%s2370_s18 + $0x8] sm:$0xff] %v1265_v30  ;;  %1287 = vst [vmem:[%s2370_s18 + $0x18] sm:$0xff] %v1267_v31  ;;  %v1230_v38 = vmul.f32 %v1035_v40, %v2168_v41  ;;  %v1232_v43 = vmul.f32 %v1124_v36, %v2171_v42  ;;  %v1258_v31 = vld [vmem:[%s2356_s26 + $0x70] sm:$0xff] }
 0x3c7   : > { %v1269_v44 = vadd.f32 %v1249_v33, %v1229_v16  ;;  %v1271_v46 = vadd.f32 %v1251_v39, %v1231_v17 }
 0x3c8   : > { %v1270_v47 = vadd.f32 %v1250_v35, %v1230_v38  ;;  %v1272_v45 = vadd.f32 %v1252_v37, %v1232_v43  ;;  %v1039_v50 = vpop.f32.mrb[16].mxu0  ;;  %v1128_v52 = vpop.f32.mrb[18].mxu1 }
 0x3c9   : > { %1289 = vst [vmem:[%s2370_s18 + $0x28] sm:$0xff] %v1269_v44  ;;  %1291 = vst [vmem:[%s2370_s18 + $0x38] sm:$0xff] %v1271_v46  ;;  %v1234_v2 = vmul.f32 %v1039_v50, %v2204_v53  ;;  %v1236_v41 = vmul.f32 %v1128_v52, %v2209_v54  ;;  %v1041_v42 = vpop.f32.mrb[17].mxu0  ;;  %v1130_v4 = vpop.f32.mrb[19].mxu1 }
 0x3ca   : > { %1290 = vst [vmem:[%s2370_s18 + $0x30] sm:$0xff] %v1270_v47  ;;  %1292 = vst [vmem:[%s2370_s18 + $0x40] sm:$0xff] %v1272_v45  ;;  %v1235_v5 = vmul.f32 %v1041_v42, %v2190_v48  ;;  %v1237_v6 = vmul.f32 %v1130_v4, %v2193_v49 }
 0x3cb   : > { %v1274_v7 = vadd.f32 %v1254_v51, %v1234_v2  ;;  %v1276_v53 = vadd.f32 %v1256_v57, %v1236_v41 }
 0x3cc   : > { %v1275_v54 = vadd.f32 %v1255_v3, %v1235_v5  ;;  %v1277_v8 = vadd.f32 %v1257_v0, %v1237_v6  ;;  %v1045_v9 = vpop.f32.mrb[18].mxu0  ;;  %v1134_v11 = vpop.f32.mrb[20].mxu1 }
 0x3cd   : > { %1294 = vst [vmem:[%s2370_s18 + $0x50] sm:$0xff] %v1274_v7  ;;  %1296 = vst [vmem:[%s2370_s18 + $0x60] sm:$0xff] %v1276_v53  ;;  %v1239_v13 = vmul.f32 %v1045_v9, %v2220_v58  ;;  %v1241_v48 = vmul.f32 %v1134_v11, %v2225_v59  ;;  %v1047_v49 = vpop.f32.mrb[19].mxu0  ;;  %v1136_v1 = vpop.f32.mrb[21].mxu1 }
 0x3ce   : > { %1295 = vst [vmem:[%s2370_s18 + $0x58] sm:$0xff] %v1275_v54  ;;  %1297 = vst [vmem:[%s2370_s18 + $0x68] sm:$0xff] %v1277_v8  ;;  %v1240_v18 = vmul.f32 %v1047_v49, %v2212_v55  ;;  %v1242_v19 = vmul.f32 %v1136_v1, %v2215_v56  ;;  %v1248_v55 = vld [vmem:[%s2356_s26 + $0x20] sm:$0xff] }
 0x3cf   : > { %v1279_v20 = vadd.f32 %v1259_v10, %v1239_v13  ;;  %v1281_v58 = vadd.f32 %v1261_v12, %v1241_v48 }
 0x3d0   : > { %v1280_v21 = vadd.f32 %v1260_v14, %v1240_v18  ;;  %v1282_v59 = vadd.f32 %v1262_v15, %v1242_v19  ;;  %v1595_v22 = vpop.f32.mrb[20].mxu0 }
 0x3d1   : > { %1299 = vst [vmem:[%s2370_s18 + $0x78] sm:$0xff] %v1279_v20  ;;  %1301 = vst [vmem:[%s2370_s18 + $0x88] sm:$0xff] %v1281_v58  ;;  %v1233_v24 = vmul.f32 %v1595_v22, %v2233_v61  ;;  %v1205_v25 = vpop.f32.mrb[21].mxu0 }
 0x3d2   : > { %1300 = vst [vmem:[%s2370_s18 + $0x80] sm:$0xff] %v1280_v21  ;;  %1302 = vst [vmem:[%s2370_s18 + $0x90] sm:$0xff] %v1282_v59  ;;  %v1228_v56 = vmul.f32 %v1205_v25, %v2228_v60 }
 0x3d3   : > { %v1273_v26 = vadd.f32 %v1253_v23, %v1233_v24 }
 0x3d4   : > { %v1268_v27 = vadd.f32 %v1248_v55, %v1228_v56  ;;  %v1598_v28 = vpop.f32.mrb[22].mxu0 }
 0x3d5   : > { %1293 = vst.msk [vmem:[%s2370_s18 + $0x48] sm:$0xff] %vm416_vm0, %v1273_v26  ;;  %v1243_v61 = vmul.f32 %v1598_v28, %v2245_v63  ;;  %v1215_v30 = vpop.f32.mrb[23].mxu0 }
 0x3d6   : > { %1288 = vst.msk [vmem:[%s2370_s18 + $0x20] sm:$0xff] %vm416_vm0, %v1268_v27  ;;  %v1238_v60 = vmul.f32 %v1215_v30, %v2238_v62 }
 0x3d7   : > { %v1283_v32 = vadd.f32 %v1263_v29, %v1243_v61 }
 0x3d8   : > { %v1278_v33 = vadd.f32 %v1258_v31, %v1238_v60 }
 0x3d9   : > { %1303 = vst.msk [vmem:[%s2370_s18 + $0x98] sm:$0xff] %vm416_vm0, %v1283_v32 }
 0x3da   : > { %1298 = vst.msk [vmem:[%s2370_s18 + $0x70] sm:$0xff] %vm416_vm0, %v1278_v33 }
 0x3db   : > { %1783 = shalt.err (!%p1780_p3)
}
 0x3dc   : > { %s1784_s22 = scalar_lea.hbm %s2427_s13, 2560  ;;  %s1788_s18 = scalar_lea.hbm %s2486_s8, 5120 }
 0x3dd   : > { %p1785_p4 = scmp.ne.s32.totalorder %s2427_s13, %s1784_s22  ;;  %p1789_p9 = scmp.lt.u32.totalorder %s2427_s13, %s2486_s8 }
 0x3de   : > { %p1790_p10 = scmp.lt.u32.totalorder %s1788_s18, %s1784_s22  ;;  %p1792_p12 = scmp.lt.u32.totalorder %s1784_s22, %s2427_s13 }
 0x3df   : > { %p1786_p7 = pnand %p1785_p4, %p1925_p5 }
 0x3e0   : > { %p1791_p11 = por %p1790_p10, %p1789_p9 }
 0x3e1   : > { %p1787_p8 = pneg %p1786_p7 }
 0x3e2   : > { %p1793_p13 = por %p1792_p12, %p1791_p11 }
 0x3e4   : > { %p1794_p0 = pnand %p1793_p13, %p1787_p8 }
 0x3e6   : > { %1797 = shalt.err (!%p1794_p0)
}
 0x3e7   : > { %s1840_s9 = smov 640   ;;  %s1841_s19 = smov 40  }
 0x3e8   : > { %1706 = dma.vmem_to_hbm [thread:$0]  (%p1925_p5), %s2429_s12, 2560, %s2427_s13, %s2437_s17, %s1840_s9, %s1840_s9, %s1841_s19  }
 0x3e9 PF: > { %p1712_p1 = scmp.ge.s32.totalorder %s1832_s30, 2  ;;  %s1333_s20 = sand.u32 1, %s1820_s27  }
 0x3ea   : > { %s1334_s23 = scalar_lea.sflag [#allocation3], %s1333_s20 }
 0x3eb   : > { %p1709_p2 = pnand %p1712_p1, %p1929_p6 }
 0x3ed   : > { %1815 = dma.done.wait (!%p1709_p2), %s1334_s23, 2560  }
 0x3ee   : > { %1817 = vsyncadd (!%p1709_p2), %s1334_s23, 4294964736  ;;  %p18_p3 = scmp.ge.s32.totalorder %s1912_s11, 4   ;;  %s2491_s27 = smov %s1824_s28 }
 0x3ef   : > { %s2492_s28 = smov %s1828_s29  ;;  %s2493_s29 = smov %s1923_s14 }
 0x3f0   : > { %s2494_s30 = smov %s1912_s11  ;;  %20 = sbr.rel (!%p18_p3) target bundleno = 3 (0x3), region = 90 }
 0x3f7   :  { %1339 = vsyncpa [#allocation3], 1 }
 0x3f8   :  { %1341 = vsyncpa [#allocation3 + $0x1], 1 }

</bundles_post_ra>
